<compile_context>
chip_gen: v7x
topology: tpu7x:2x2x1
jax: 0.10.0
libtpu: 0.0.40
codegen_flags: <defaults>
</compile_context>

<pallas_src>
import numpy as np
import jax
import jax.numpy as jnp
from jax.experimental import pallas as pl
from jax.experimental.pallas import tpu as pltpu


HARD_SHRINK_LAMBDA = 0.5  # torch.nn.Hardshrink() default
# The ones-row bias fold requires Hardshrink(1.0) == 1.0, i.e. lambda < 1.
assert HARD_SHRINK_LAMBDA < 1.0


def _hardshrink(x, lam=HARD_SHRINK_LAMBDA):
    # Hardshrink(x) = x if |x| > lambda else 0   (computed in f32)
    return jnp.where(jnp.abs(x) > lam, x, jnp.zeros_like(x))


def _round_up(x, m):
    return -(-x // m) * m


def pack_generator_params(params, input_size, *, compute_dtype=jnp.float32):
    """One-time host-side packing of the (W, b) pairs (NOT in the per-call path).

    Weights stay in torch (out, in) orientation so the kernel computes
    h = W @ x.  Biases of layers 1..L-1 are written into the column of the
    "ones row" so they ride the matmul; layer 0's bias (plus the 1.0 seed of
    the ones row) goes into a tiny (f_pad, 1) vector added once.
    """
    num_layers = len(params)
    hidden = params[0][0].shape[0]
    out_size = params[-1][0].shape[0]
    ones_row = hidden                                   # constant-1 row index
    f_pad = _round_up(max(input_size, hidden + 1, out_size), 8)

    w_np = np.zeros((num_layers, f_pad, f_pad), np.float32)
    c0_np = np.zeros((f_pad, 1), np.float32)
    for l, (w, b) in enumerate(params):
        w = np.asarray(w, np.float32)
        b = np.asarray(b, np.float32)
        of, inf = w.shape
        w_np[l, :of, :inf] = w
        if l == 0:
            c0_np[:of, 0] = b                           # explicit layer-0 bias
            c0_np[ones_row, 0] = 1.0                    # plant the ones row
        else:
            w_np[l, :of, ones_row] = b                  # bias * h[ones_row](==1)
            if l < num_layers - 1:
                w_np[l, ones_row, ones_row] = 1.0       # carry the 1 forward

    w_packed = jnp.asarray(w_np, dtype=compute_dtype)
    # Round c0 exactly like the folded biases so f32/bf16 paths are consistent.
    c0 = jnp.asarray(c0_np, dtype=compute_dtype).astype(jnp.float32)
    return {
        "w": w_packed,
        "c0": c0,
        "in_size": int(input_size),
        "out_size": int(out_size),
        "hidden_size": int(hidden),
        "f_pad": int(f_pad),
        "num_layers": int(num_layers),
        "compute_dtype": compute_dtype,
    }


def _make_generator_kernel(num_layers, in_size, out_size, compute_dtype):
    def kernel(x_ref, w_ref, c0_ref, o_ref):
        # x_ref : (in_size, T)       activations; batch on lanes (lane-dense)
        # w_ref : (L, f_pad, f_pad)  packed weights, resident (constant index)
        # c0_ref: (f_pad, 1)         layer-0 bias + ones-row seed (f32)
        # o_ref : (out_size, T)      lane-dense output slab
        x = x_ref[...]
        # Layer 0: contract only over the real input rows (no padded DMA).
        h = jnp.dot(w_ref[0, :, :in_size], x, preferred_element_type=jnp.float32)
        h = h + c0_ref[...]                   # single bias add; plants ones row
        h = _hardshrink(h)                    # f32 compare (v5e VPU has no bf16)
        for layer in range(1, num_layers):
            h = jnp.dot(w_ref[layer], h.astype(compute_dtype),
                        preferred_element_type=jnp.float32)
            if layer < num_layers - 1:
                h = _hardshrink(h)            # ones row passes through (|1|>0.5)
        o_ref[...] = h[:out_size, :].astype(o_ref.dtype)
    return kernel


def generator_forward(noise, packed, *, batch_tile=512, batch_major_io=True,
                      single_buffer_weights=False, vmem_limit_bytes=None):
    """Generator forward pass via a Pallas TPU kernel.

    noise : (B, in_size) if batch_major_io else (in_size, B)   (feature-major
            I/O skips both host-side transposes entirely)
    packed: result of pack_generator_params (packed once, reused per call)
    """
    compute_dtype = packed["compute_dtype"]
    in_size, out_size = packed["in_size"], packed["out_size"]
    f_pad, num_layers = packed["f_pad"], packed["num_layers"]

    x_t = noise.T if batch_major_io else noise
    assert x_t.shape[0] == in_size
    B = x_t.shape[1]
    x_t = x_t.astype(compute_dtype)           # bf16 I/O halves activation DMA

    assert batch_tile % 128 == 0, "batch_tile must be a multiple of 128"
    # Don't allocate tiles wider than the (lane-padded) batch; keep x128.
    batch_tile = min(batch_tile, _round_up(B, 128))
    grid = (pl.cdiv(B, batch_tile),)          # ragged last tile handled by Pallas

    w_spec_kwargs = {}
    if single_buffer_weights:
        # v7x (64 MiB physical VMEM): no point double-buffering a block whose
        # index never changes.
        w_spec_kwargs["pipeline_mode"] = pl.Buffered(1)

    kernel = _make_generator_kernel(num_layers, in_size, out_size, compute_dtype)

    out = pl.pallas_call(
        kernel,
        out_shape=jax.ShapeDtypeStruct((out_size, B), jnp.float32),
        grid_spec=pltpu.PrefetchScalarGridSpec(
            num_scalar_prefetch=0,
            grid=grid,
            in_specs=[
                # batch-tiled activations (only the real in_size rows)
                pl.BlockSpec((in_size, batch_tile), lambda i: (0, i)),
                # whole packed weight slab, resident across all grid steps
                pl.BlockSpec((num_layers, f_pad, f_pad), lambda i: (0, 0, 0),
                             **w_spec_kwargs),
                # tiny layer-0 bias / ones-row vector, resident
                pl.BlockSpec((f_pad, 1), lambda i: (0, 0)),
            ],
            out_specs=pl.BlockSpec((out_size, batch_tile), lambda i: (0, i)),
        ),
        compiler_params=pltpu.CompilerParams(
            dimension_semantics=("parallel",),   # megacore sharding on v7x
            vmem_limit_bytes=vmem_limit_bytes,   # raise on v5e / large hidden
        ),
    )(x_t, packed["w"], packed["c0"])

    return out.T if batch_major_io else out


def init_params(key, input_size, hidden_size, output_size):
    """Deterministic init matching nn.Linear: W (out,in), b (out,), U(-1/sqrt(fan_in), +)."""
    dims = [(input_size, hidden_size),
            (hidden_size, hidden_size),
            (hidden_size, hidden_size),
            (hidden_size, hidden_size),
            (hidden_size, output_size)]
    params = []
    for (fan_in, fan_out) in dims:
        key, kw, kb = jax.random.split(key, 3)
        bound = 1.0 / jnp.sqrt(jnp.float32(fan_in))
        w = jax.random.uniform(kw, (fan_out, fan_in), jnp.float32, -bound, bound)
        b = jax.random.uniform(kb, (fan_out,), jnp.float32, -bound, bound)
        params.append((w, b))
    return params


def generator_reference(noise, params, compute_dtype=jnp.float32):
    """Pure-JAX reference (torch semantics y = x @ W^T + b, f32 accumulate)."""
    h = noise.astype(compute_dtype)
    for i, (w, b) in enumerate(params):
        acc = jnp.dot(h, w.astype(compute_dtype).T,
                      preferred_element_type=jnp.float32)
        acc = acc + b.astype(compute_dtype).astype(jnp.float32)
        if i < len(params) - 1:
            h = _hardshrink(acc).astype(compute_dtype)
        else:
            h = acc
    return h


if __name__ == "__main__":
    input_size, hidden_size, output_size = 16, 32, 16
    batch = 8

    key = jax.random.PRNGKey(0)
    key, knoise = jax.random.split(key)
    noise = jax.random.normal(knoise, (batch, input_size), jnp.float32)
    params = init_params(key, input_size, hidden_size, output_size)

    # f32 compute path (works on all chips).
    packed_f32 = pack_generator_params(params, input_size)
    out = jax.block_until_ready(generator_forward(noise, packed_f32))
    ref = generator_reference(noise, params)
    assert out.shape == (batch, output_size)
    assert jnp.allclose(out, ref, atol=1e-4, rtol=1e-4), "f32 mismatch vs JAX reference"

    # bf16 compute path (halves weight/activation DMA, MXU-native on v6e/v7x);
    # compared against a reference applying the same casts.
    packed_bf16 = pack_generator_params(params, input_size,
                                        compute_dtype=jnp.bfloat16)
    out_bf16 = jax.block_until_ready(generator_forward(noise, packed_bf16))
    ref_bf16 = generator_reference(noise, params, compute_dtype=jnp.bfloat16)
    assert out_bf16.shape == (batch, output_size)
    assert jnp.allclose(out_bf16, ref_bf16, atol=2e-2, rtol=2e-2), "bf16 mismatch vs JAX reference"

    print("KERNEL_OK")
</pallas_src>

<mosaic_0001>
module attributes {stable_mosaic.version = 11 : i64} {
  func.func @kernel(%arg0: i32, %arg1: memref<16x128xf32, #tpu.memory_space<vmem>>, %arg2: memref<5x40x40xf32, #tpu.memory_space<vmem>>, %arg3: memref<40x1xf32, #tpu.memory_space<vmem>>, %arg4: memref<16x128xf32, #tpu.memory_space<vmem>>) attributes {dimension_semantics = [#tpu.dimension_semantics<parallel>], iteration_bounds = array<i64: 1>, scalar_prefetch = 0 : i64, scratch_operands = 0 : i64, tpu.core_type = #tpu.core_type<tc>, window_params = [{transform_indices = @transform_0, window_bounds = array<i64: 16, 128>}, {pipeline_mode = #tpu.pipeline_mode<synchronous>, transform_indices = @transform_1, window_bounds = array<i64: 5, 40, 40>}, {pipeline_mode = #tpu.pipeline_mode<synchronous>, transform_indices = @transform_2, window_bounds = array<i64: 40, 1>}, {transform_indices = @transform_3, window_bounds = array<i64: 16, 128>}]} {
    %c0 = arith.constant 0 : index
    %c0_0 = arith.constant 0 : index
    %0 = vector.load %arg1[%c0, %c0_0] : memref<16x128xf32, #tpu.memory_space<vmem>>, vector<16x128xf32>
    %c0_1 = arith.constant 0 : index
    %c0_2 = arith.constant 0 : index
    %c0_3 = arith.constant 0 : index
    %1 = vector.load %arg2[%c0_1, %c0_2, %c0_3] : memref<5x40x40xf32, #tpu.memory_space<vmem>>, vector<1x40x16xf32>
    %2 = vector.shape_cast %1 : vector<1x40x16xf32> to vector<40x16xf32>
    %cst = arith.constant dense<0.000000e+00> : vector<40x128xf32>
    %3 = tpu.matmul %2, %0, %cst {dimension_numbers = #tpu.dot_dimension_numbers<[1], [0], [0], [1], [0, 0, 1, 1], [], []>} : vector<40x16xf32>, vector<16x128xf32>, vector<40x128xf32> -> vector<40x128xf32>
    %c0_4 = arith.constant 0 : index
    %c0_5 = arith.constant 0 : index
    %4 = vector.load %arg3[%c0_4, %c0_5] : memref<40x1xf32, #tpu.memory_space<vmem>>, vector<40x1xf32>
    %5 = vector.broadcast %4 : vector<40x1xf32> to vector<40x128xf32>
    %6 = arith.addf %3, %5 : vector<40x128xf32>
    %7 = math.absf %6 : vector<40x128xf32>
    %cst_6 = arith.constant 5.000000e-01 : f32
    %8 = vector.broadcast %cst_6 : f32 to vector<40x128xf32>
    %9 = arith.cmpf ogt, %7, %8 : vector<40x128xf32>
    %cst_7 = arith.constant 0.000000e+00 : f32
    %10 = vector.broadcast %cst_7 : f32 to vector<40x128xf32>
    %11 = arith.select %9, %6, %10 : vector<40x128xi1>, vector<40x128xf32>
    %c1 = arith.constant 1 : index
    %c0_8 = arith.constant 0 : index
    %c0_9 = arith.constant 0 : index
    %12 = vector.load %arg2[%c1, %c0_8, %c0_9] : memref<5x40x40xf32, #tpu.memory_space<vmem>>, vector<1x40x40xf32>
    %13 = vector.shape_cast %12 : vector<1x40x40xf32> to vector<40x40xf32>
    %cst_10 = arith.constant dense<0.000000e+00> : vector<40x128xf32>
    %14 = tpu.matmul %13, %11, %cst_10 {dimension_numbers = #tpu.dot_dimension_numbers<[1], [0], [0], [1], [0, 0, 1, 1], [], []>} : vector<40x40xf32>, vector<40x128xf32>, vector<40x128xf32> -> vector<40x128xf32>
    %15 = math.absf %14 : vector<40x128xf32>
    %cst_11 = arith.constant 5.000000e-01 : f32
    %16 = vector.broadcast %cst_11 : f32 to vector<40x128xf32>
    %17 = arith.cmpf ogt, %15, %16 : vector<40x128xf32>
    %cst_12 = arith.constant 0.000000e+00 : f32
    %18 = vector.broadcast %cst_12 : f32 to vector<40x128xf32>
    %19 = arith.select %17, %14, %18 : vector<40x128xi1>, vector<40x128xf32>
    %c2 = arith.constant 2 : index
    %c0_13 = arith.constant 0 : index
    %c0_14 = arith.constant 0 : index
    %20 = vector.load %arg2[%c2, %c0_13, %c0_14] : memref<5x40x40xf32, #tpu.memory_space<vmem>>, vector<1x40x40xf32>
    %21 = vector.shape_cast %20 : vector<1x40x40xf32> to vector<40x40xf32>
    %cst_15 = arith.constant dense<0.000000e+00> : vector<40x128xf32>
    %22 = tpu.matmul %21, %19, %cst_15 {dimension_numbers = #tpu.dot_dimension_numbers<[1], [0], [0], [1], [0, 0, 1, 1], [], []>} : vector<40x40xf32>, vector<40x128xf32>, vector<40x128xf32> -> vector<40x128xf32>
    %23 = math.absf %22 : vector<40x128xf32>
    %cst_16 = arith.constant 5.000000e-01 : f32
    %24 = vector.broadcast %cst_16 : f32 to vector<40x128xf32>
    %25 = arith.cmpf ogt, %23, %24 : vector<40x128xf32>
    %cst_17 = arith.constant 0.000000e+00 : f32
    %26 = vector.broadcast %cst_17 : f32 to vector<40x128xf32>
    %27 = arith.select %25, %22, %26 : vector<40x128xi1>, vector<40x128xf32>
    %c3 = arith.constant 3 : index
    %c0_18 = arith.constant 0 : index
    %c0_19 = arith.constant 0 : index
    %28 = vector.load %arg2[%c3, %c0_18, %c0_19] : memref<5x40x40xf32, #tpu.memory_space<vmem>>, vector<1x40x40xf32>
    %29 = vector.shape_cast %28 : vector<1x40x40xf32> to vector<40x40xf32>
    %cst_20 = arith.constant dense<0.000000e+00> : vector<40x128xf32>
    %30 = tpu.matmul %29, %27, %cst_20 {dimension_numbers = #tpu.dot_dimension_numbers<[1], [0], [0], [1], [0, 0, 1, 1], [], []>} : vector<40x40xf32>, vector<40x128xf32>, vector<40x128xf32> -> vector<40x128xf32>
    %31 = math.absf %30 : vector<40x128xf32>
    %cst_21 = arith.constant 5.000000e-01 : f32
    %32 = vector.broadcast %cst_21 : f32 to vector<40x128xf32>
    %33 = arith.cmpf ogt, %31, %32 : vector<40x128xf32>
    %cst_22 = arith.constant 0.000000e+00 : f32
    %34 = vector.broadcast %cst_22 : f32 to vector<40x128xf32>
    %35 = arith.select %33, %30, %34 : vector<40x128xi1>, vector<40x128xf32>
    %c4 = arith.constant 4 : index
    %c0_23 = arith.constant 0 : index
    %c0_24 = arith.constant 0 : index
    %36 = vector.load %arg2[%c4, %c0_23, %c0_24] : memref<5x40x40xf32, #tpu.memory_space<vmem>>, vector<1x40x40xf32>
    %37 = vector.shape_cast %36 : vector<1x40x40xf32> to vector<40x40xf32>
    %cst_25 = arith.constant dense<0.000000e+00> : vector<40x128xf32>
    %38 = tpu.matmul %37, %35, %cst_25 {dimension_numbers = #tpu.dot_dimension_numbers<[1], [0], [0], [1], [0, 0, 1, 1], [], []>} : vector<40x40xf32>, vector<40x128xf32>, vector<40x128xf32> -> vector<40x128xf32>
    %39 = vector.extract_strided_slice %38 {offsets = [0, 0], sizes = [16, 128], strides = [1, 1]} : vector<40x128xf32> to vector<16x128xf32>
    %c0_26 = arith.constant 0 : index
    %c0_27 = arith.constant 0 : index
    %40 = vector.load %arg4[%c0_26, %c0_27] : memref<16x128xf32, #tpu.memory_space<vmem>>, vector<16x128xf32>
    tpu.vector_store %arg4[%c0_26, %c0_27], %39 {strides = array<i32>} : memref<16x128xf32, #tpu.memory_space<vmem>>, vector<16x128xf32>,
    return
  }
  func.func @transform_0(%arg0: i32) -> (i32, i32) {
    %c0_i32 = arith.constant 0 : i32
    %c0_i32_0 = arith.constant 0 : i32
    return %c0_i32, %arg0 : i32, i32
  }
  func.func @transform_1(%arg0: i32) -> (i32, i32, i32) {
    %c0_i32 = arith.constant 0 : i32
    %c0_i32_0 = arith.constant 0 : i32
    %c0_i32_1 = arith.constant 0 : i32
    %c0_i32_2 = arith.constant 0 : i32
    return %c0_i32, %c0_i32_0, %c0_i32_1 : i32, i32, i32
  }
  func.func @transform_2(%arg0: i32) -> (i32, i32) {
    %c0_i32 = arith.constant 0 : i32
    %c0_i32_0 = arith.constant 0 : i32
    %c0_i32_1 = arith.constant 0 : i32
    return %c0_i32, %c0_i32_0 : i32, i32
  }
  func.func @transform_3(%arg0: i32) -> (i32, i32) {
    %c0_i32 = arith.constant 0 : i32
    %c0_i32_0 = arith.constant 0 : i32
    return %c0_i32, %arg0 : i32, i32
  }
}

</mosaic_0001>

<bundles_post_ra>
// kernel: tpu_custom_call.1
= control target key start
LH: loop header
LB: loop body
LE: loop exit
PB: predicated region body
PF: predicated region fallthrough
CT: control target
= control target key end

     0   :  { %8 = vsyncpa [#allocation3], 0  ;;  %s961_s12 = smov [#allocation2]   ;;  %s1116_s0 = inlined_call_operand.vmem [shape: f32[16,8], index: 0, kind: input, shape index: {}]   ;;  %s1117_s1 = inlined_call_operand.hbm [shape: f32[5,40,40], index: 1, kind: input, shape index: {}]   ;;  %s1118_s2 = inlined_call_operand.vmem [shape: f32[40,1], index: 2, kind: input, shape index: {}]   ;;  %s1119_s3 = inlined_call_operand.vmem [shape: f32[16,8], index: 3, kind: output, shape index: {}]  }
   0x1   :  { %s16_s13 = sshll.u32 %s961_s12, 4  ;;  %s937_s16 = scalar_lea.hbm %s1117_s1, 3200  ;;  %s17_s13 = int_to_ptr.vmem [resolvable:$true] %s16_s13 }
   0x2   :  { %p938_p0 = scmp.ne.s32.totalorder %s1117_s1, %s937_s16  ;;  %p941_p1 = scmp.lt.u32.totalorder %s937_s16, %s1117_s1 }
   0x4   :  { %p943_p2 = pnand %p941_p1, %p938_p0 }
   0x6   :  { %946 = shalt.err (!%p943_p2)
}
   0x7   :  { %s947_s21 = scalar_lea.vmem %s17_s13, 3200  ;;  %p952_p4 = scmp.lt.s32.totalorder %s17_s13, %s17_s13 }
   0x8   :  { %p948_p3 = scmp.ne.s32.totalorder %s17_s13, %s947_s21  ;;  %p953_p5 = scmp.lt.s32.totalorder %s947_s21, %s947_s21 }
   0xa   :  { %p954_p6 = por %p953_p5, %p952_p4 }
   0xc   :  { %p955_p7 = pnand %p954_p6, %p948_p3 }
   0xe   :  { %958 = shalt.err (!%p955_p7)
}
   0xf   :  { %s962_s22 = smov 128   ;;  %s963_s23 = smov 8  }
  0x10   :  { %22 = dma.hbm_to_vmem [thread:$0]  %s1117_s1, 3200, %s17_s13, [#allocation3], %s962_s22, %s962_s22, %s963_s23  }
  0x11   :  { %959 = dma.done.wait [#allocation3], 3200  }
  0x12   :  { %960 = vsyncadd [#allocation3], 4294964096  ;;  %v964_v0 = vmov 0.0|0.0   ;;  %vm965_vm0 = vmmov 0   ;;  %v966_v1 = vmov 0.0   ;;  %v967_v2 = vmov 0  }
  0x13   :  { %891 = vmatprep.subr.bf16.mxu0 %v964_v0  ;;  %926 = vmatprep.subr.bf16.mxu1 %v964_v0  ;;  %v28_v3 = vld [vmem:[%s1116_s0] sm:$0xff]  ;;  %v29_v4 = vld [vmem:[%s1116_s0 + $0x8] sm:$0xff]  ;;  %vm65_vm1 = vcmask 130048   ;;  %v33_v8 = vld [vmem:[#allocation2 + $0x18] sm:$0xff]  ;;  %vm192_vm8 = vcmask 326656  }
  0x14   :  { %776 = vmatprep.mubr.msk.f32.mxu0 %vm965_vm0, %v966_v1  ;;  %785 = vmatprep.mubr.msk.f32.mxu1 %vm965_vm0, %v966_v1  ;;  %v892_v5 = vpack.c.bf16 %v29_v4, %v28_v3  ;;  %v35_v6 = vld [vmem:[%s1118_s2] sm:$0xff]  ;;  %v37_v9 = vld [vmem:[%s1118_s2 + $0x10] sm:$0xff]  ;;  %v36_v10 = vld [vmem:[%s1118_s2 + $0x8] sm:$0xff] }
  0x15   :  { %935 = vset.pattern.permute.xlu0 %v967_v2  ;;  %936 = vset.pattern.permute.xlu1 %v967_v2  ;;  %v30_v7 = vld [vmem:[#allocation2] sm:$0xff]  ;;  %v38_v11 = vld [vmem:[%s1118_s2 + $0x18] sm:$0xff]  ;;  %v31_v12 = vld [vmem:[#allocation2 + $0x8] sm:$0xff] }
  0x16   :  { %893 = vmatpush3.bf16.msra.mxu0 %v892_v5  ;;  %927 = vmatpush3.bf16.msra.mxu1 %v892_v5  ;;  %v34_v13 = vld [vmem:[#allocation2 + $0x20] sm:$0xff]  ;;  %v32_v15 = vld [vmem:[#allocation2 + $0x10] sm:$0xff]  ;;  %v187_v43 = vld [vmem:[#allocation2 + $0x28] sm:$0xff] }
  0x17   :  { %42 = vperm.xlu0 %935, %v35_v6   ;;  %52 = vperm.xlu1 %936, %v37_v9   ;;  %v39_v14 = vld [vmem:[%s1118_s2 + $0x20] sm:$0xff]  ;;  %v188_v44 = vld [vmem:[#allocation2 + $0x30] sm:$0xff]  ;;  %v189_v45 = vld [vmem:[#allocation2 + $0x38] sm:$0xff] }
  0x18   :  { %894 = vmatprep.subr.bf16.mxu1 %v964_v0  ;;  %902 = vmatprep.subr.bf16.mxu0 %v964_v0  ;;  %v190_v46 = vld [vmem:[#allocation2 + $0x40] sm:$0xff]  ;;  %v191_v47 = vld [vmem:[#allocation2 + $0x48] sm:$0xff]  ;;  %v314_v3 = vld [vmem:[#allocation2 + $0x50] sm:$0xff] }
  0x19   :  { %777 = vmatmul.mubr.msk.f32.vlgmr.msra.gmra.mrb[0].mxu0 %vm65_vm1, %v30_v7  ;;  %786 = vmatmul.mubr.msk.f32.vlgmr.msra.gmra.mrb[0].mxu1 %vm65_vm1, %v33_v8  ;;  %v315_v4 = vld [vmem:[#allocation2 + $0x58] sm:$0xff]  ;;  %v316_v5 = vld [vmem:[#allocation2 + $0x60] sm:$0xff]  ;;  %v317_v6 = vld [vmem:[#allocation2 + $0x68] sm:$0xff] }
  0x1a   :  { %779 = vmatprep.mubr.msk.f32.mxu0 %vm965_vm0, %v966_v1  ;;  %788 = vmatprep.mubr.msk.f32.mxu1 %vm965_vm0, %v966_v1  ;;  %v318_v7 = vld [vmem:[#allocation2 + $0x70] sm:$0xff] }
  0x1b   :  { %47 = vperm.xlu0 %935, %v36_v10   ;;  %57 = vperm.xlu1 %936, %v38_v11  }
  0x1d   :  { %780 = vmatmul.mubr.msk.f32.gmra.mrb[2].mxu0 %vm65_vm1, %v31_v12  ;;  %789 = vmatmul.mubr.msk.f32.gmra.mrb[2].mxu1 %vm65_vm1, %v34_v13 }
  0x1e   :  { %782 = vmatprep.mubr.msk.f32.mxu0 %vm965_vm0, %v966_v1  ;;  %801 = vmatprep.mubr.msk.f32.mxu1 %vm965_vm0, %v966_v1 }
  0x1f   :  { %62 = vperm.xlu0 %935, %v39_v14  }
  0x21   :  { %783 = vmatmul.mubr.msk.f32.gmra.mrb[4].mxu0 %vm65_vm1, %v32_v15 }
  0x22   :  { %826 = vmatprep.mubr.msk.f32.mxu0 %vm965_vm0, %v966_v1 }
  0x96   :  { %v53_v16 = vpop.permute.xlu1 %52  ;;  %v43_v17 = vpop.permute.xlu0 %42 }
  0x9a   :  { %v58_v23 = vpop.permute.xlu1 %57  ;;  %v48_v24 = vpop.permute.xlu0 %47 }
  0x9e   :  { %v63_v35 = vpop.permute.xlu0 %62 }
  0xec   :  { %v147_v18 = vpop.f32.mrb[0].mxu0  ;;  %v162_v19 = vpop.f32.mrb[0].mxu1 }
  0xed   :  { %v148_v20 = vadd.f32 %v147_v18, %v43_v17  ;;  %v778_v21 = vpop.f32.mrb[1].mxu0  ;;  %v787_v22 = vpop.f32.mrb[1].mxu1  ;;  %v163_v28 = vadd.f32 %v162_v19, %v58_v23 }
  0xef   :  { %v171_v27 = vand.u32 2147483647, %v148_v20  ;;  %v174_v36 = vand.u32 2147483647, %v163_v28 }
  0xf0   :  { %v152_v25 = vpop.f32.mrb[2].mxu0  ;;  %v167_v26 = vpop.f32.mrb[2].mxu1 }
  0xf1   :  { %v153_v29 = vadd.f32 %v152_v25, %v48_v24  ;;  %v781_v30 = vpop.f32.mrb[3].mxu0  ;;  %v790_v31 = vpop.f32.mrb[3].mxu1  ;;  %vm176_vm2 = vcmp.gt.f32.partialorder %v171_v27, 0.5  ;;  %v168_v39 = vadd.f32 %v167_v26, %v63_v35  ;;  %vm179_vm5 = vcmp.gt.f32.partialorder %v174_v36, 0.5  ;;  %v440_v25 = vld [vmem:[#allocation2 + $0x78] sm:$0xff]  ;;  %v441_v26 = vld [vmem:[#allocation2 + $0x80] sm:$0xff] }
  0xf2   :  { %v442_v27 = vld [vmem:[#allocation2 + $0x88] sm:$0xff] }
  0xf3   :  { %v172_v32 = vand.u32 2147483647, %v153_v29  ;;  %v895_v33 = vpack.c.bf16 %v153_v29, %v148_v20  ;;  %v175_v42 = vand.u32 2147483647, %v168_v39  ;;  %v444_v29 = vld [vmem:[#allocation2 + $0x98] sm:$0xff] }
  0xf4   :  { %v157_v34 = vpop.f32.mrb[4].mxu0 }
  0xf5   :  { %vm177_vm3 = vcmp.gt.f32.partialorder %v172_v32, 0.5  ;;  %v158_v37 = vadd.f32 %v157_v34, %v53_v16  ;;  %v784_v38 = vpop.f32.mrb[5].mxu0  ;;  %vm180_vm9 = vcmp.gt.f32.partialorder %v175_v42, 0.5 }
  0xf6   :  { %vm896_vm4 = vmpackc.low %vm177_vm3, %vm176_vm2 }
  0xf7   :  { %v173_v40 = vand.u32 2147483647, %v158_v37  ;;  %v899_v41 = vpack.c.bf16 %v163_v28, %v158_v37  ;;  %897 = vmatpush3.bf16.msk.msra.mxu1 %vm896_vm4, %v895_v33  ;;  %v443_v28 = vld [vmem:[#allocation2 + $0x90] sm:$0xff] }
  0xf8   :  { %898 = vmatprep.subr.bf16.mxu1 %v964_v0 }
  0xf9   :  { %vm178_vm6 = vcmp.gt.f32.partialorder %v173_v40, 0.5 }
  0xfa   :  { %vm900_vm7 = vmpackc.low %vm179_vm5, %vm178_vm6 }
  0xfb   :  { %901 = vmatpush3.bf16.msk.msra.mxu1 %vm900_vm7, %v899_v41 }
  0xfc   :  { %799 = vmatprep.subr.mxu1 %v966_v1 }
  0xff   :  { %800 = vmatpush3.msk.msra.mxu1 %vm180_vm9, %v168_v39 }
 0x100   :  { %802 = vmatmul.mubr.msk.f32.vlgmr.msra.gmra.mrb[4].mxu1 %vm192_vm8, %v187_v43  ;;  %910 = vmatprep.subr.bf16.mxu1 %v964_v0 }
 0x101   :  { %804 = vmatprep.mubr.msk.f32.mxu1 %vm965_vm0, %v966_v1 }
 0x104   :  { %805 = vmatmul.mubr.msk.f32.gmra.mrb[6].mxu1 %vm192_vm8, %v188_v44 }
 0x105   :  { %807 = vmatprep.mubr.msk.f32.mxu1 %vm965_vm0, %v966_v1 }
 0x108   :  { %808 = vmatmul.mubr.msk.f32.gmra.mrb[8].mxu1 %vm192_vm8, %v189_v45 }
 0x109   :  { %810 = vmatprep.mubr.msk.f32.mxu1 %vm965_vm0, %v966_v1 }
 0x10c   :  { %811 = vmatmul.mubr.msk.f32.gmra.mrb[10].mxu1 %vm192_vm8, %v190_v46 }
 0x10d   :  { %813 = vmatprep.mubr.msk.f32.mxu1 %vm965_vm0, %v966_v1 }
 0x110   :  { %814 = vmatmul.mubr.msk.f32.gmra.mrb[12].mxu1 %vm192_vm8, %v191_v47  ;;  %v566_v47 = vld [vmem:[#allocation2 + $0xa0] sm:$0xff] }
 0x111   :  { %851 = vmatprep.mubr.msk.f32.mxu1 %vm965_vm0, %v966_v1 }
 0x1d3   :  { %v274_v48 = vpop.f32.mrb[4].mxu1 }
 0x1d4   :  { %v803_v49 = vpop.f32.mrb[5].mxu1  ;;  %v298_v50 = vand.u32 2147483647, %v274_v48 }
 0x1d5   :  { %v569_v49 = vld [vmem:[#allocation2 + $0xb8] sm:$0xff] }
 0x1d6   :  { %vm303_vm10 = vcmp.gt.f32.partialorder %v298_v50, 0.5  ;;  %v570_v50 = vld [vmem:[#allocation2 + $0xc0] sm:$0xff] }
 0x1d7   :  { %v279_v51 = vpop.f32.mrb[6].mxu1 }
 0x1d8   :  { %v299_v52 = vand.u32 2147483647, %v279_v51  ;;  %v903_v53 = vpack.c.bf16 %v279_v51, %v274_v48  ;;  %v806_v54 = vpop.f32.mrb[7].mxu1  ;;  %v568_v48 = vld [vmem:[#allocation2 + $0xb0] sm:$0xff] }
 0x1da   :  { %vm304_vm11 = vcmp.gt.f32.partialorder %v299_v52, 0.5 }
 0x1db   :  { %vm904_vm12 = vmpackc.low %vm304_vm11, %vm303_vm10  ;;  %v284_v55 = vpop.f32.mrb[8].mxu1 }
 0x1dc   :  { %v809_v56 = vpop.f32.mrb[9].mxu1  ;;  %905 = vmatpush3.bf16.msk.msra.mxu0 %vm904_vm12, %v903_v53  ;;  %v300_v57 = vand.u32 2147483647, %v284_v55 }
 0x1dd   :  { %906 = vmatprep.subr.bf16.mxu0 %v964_v0 }
 0x1de   :  { %vm305_vm13 = vcmp.gt.f32.partialorder %v300_v57, 0.5 }
 0x1df   :  { %v289_v58 = vpop.f32.mrb[10].mxu1 }
 0x1e0   :  { %v301_v59 = vand.u32 2147483647, %v289_v58  ;;  %v907_v60 = vpack.c.bf16 %v289_v58, %v284_v55  ;;  %v812_v61 = vpop.f32.mrb[11].mxu1 }
 0x1e2   :  { %vm306_vm14 = vcmp.gt.f32.partialorder %v301_v59, 0.5 }
 0x1e3   :  { %vm908_vm15 = vmpackc.low %vm306_vm14, %vm305_vm13  ;;  %v294_v62 = vpop.f32.mrb[12].mxu1 }
 0x1e4   :  { %v302_v63 = vand.u32 2147483647, %v294_v62  ;;  %v815_v2 = vpop.f32.mrb[13].mxu1  ;;  %909 = vmatpush3.bf16.msk.msra.mxu0 %vm908_vm15, %v907_v60 }
 0x1e5   :  { %824 = vmatprep.subr.mxu0 %v966_v1 }
 0x1e6   :  { %vm307_vm1 = vcmp.gt.f32.partialorder %v302_v63, 0.5 }
 0x1e8   :  { %825 = vmatpush3.msk.msra.mxu0 %vm307_vm1, %v294_v62 }
 0x1e9   :  { %827 = vmatmul.mubr.msk.f32.vlgmr.msra.gmra.mrb[6].mxu0 %vm192_vm8, %v314_v3  ;;  %918 = vmatprep.subr.bf16.mxu0 %v964_v0 }
 0x1ea   :  { %829 = vmatprep.mubr.msk.f32.mxu0 %vm965_vm0, %v966_v1 }
 0x1ed   :  { %830 = vmatmul.mubr.msk.f32.gmra.mrb[8].mxu0 %vm192_vm8, %v315_v4 }
 0x1ee   :  { %832 = vmatprep.mubr.msk.f32.mxu0 %vm965_vm0, %v966_v1 }
 0x1f1   :  { %833 = vmatmul.mubr.msk.f32.gmra.mrb[10].mxu0 %vm192_vm8, %v316_v5 }
 0x1f2   :  { %835 = vmatprep.mubr.msk.f32.mxu0 %vm965_vm0, %v966_v1 }
 0x1f5   :  { %836 = vmatmul.mubr.msk.f32.gmra.mrb[12].mxu0 %vm192_vm8, %v317_v6 }
 0x1f6   :  { %838 = vmatprep.mubr.msk.f32.mxu0 %vm965_vm0, %v966_v1 }
 0x1f9   :  { %839 = vmatmul.mubr.msk.f32.gmra.mrb[14].mxu0 %vm192_vm8, %v318_v7 }
 0x1fa   :  { %876 = vmatprep.mubr.msk.f32.mxu0 %vm965_vm0, %v966_v1 }
 0x2bc   :  { %v400_v8 = vpop.f32.mrb[6].mxu0 }
 0x2bd   :  { %v828_v9 = vpop.f32.mrb[7].mxu0  ;;  %v424_v10 = vand.u32 2147483647, %v400_v8 }
 0x2bf   :  { %vm429_vm2 = vcmp.gt.f32.partialorder %v424_v10, 0.5 }
 0x2c0   :  { %v405_v11 = vpop.f32.mrb[8].mxu0 }
 0x2c1   :  { %v425_v12 = vand.u32 2147483647, %v405_v11  ;;  %v911_v13 = vpack.c.bf16 %v405_v11, %v400_v8  ;;  %v831_v14 = vpop.f32.mrb[9].mxu0 }
 0x2c3   :  { %vm430_vm3 = vcmp.gt.f32.partialorder %v425_v12, 0.5 }
 0x2c4   :  { %vm912_vm4 = vmpackc.low %vm430_vm3, %vm429_vm2  ;;  %v410_v15 = vpop.f32.mrb[10].mxu0 }
 0x2c5   :  { %v834_v16 = vpop.f32.mrb[11].mxu0  ;;  %913 = vmatpush3.bf16.msk.msra.mxu1 %vm912_vm4, %v911_v13  ;;  %v426_v17 = vand.u32 2147483647, %v410_v15 }
 0x2c6   :  { %914 = vmatprep.subr.bf16.mxu1 %v964_v0 }
 0x2c7   :  { %vm431_vm5 = vcmp.gt.f32.partialorder %v426_v17, 0.5 }
 0x2c8   :  { %v415_v18 = vpop.f32.mrb[12].mxu0 }
 0x2c9   :  { %v427_v19 = vand.u32 2147483647, %v415_v18  ;;  %v915_v20 = vpack.c.bf16 %v415_v18, %v410_v15  ;;  %v837_v21 = vpop.f32.mrb[13].mxu0 }
 0x2cb   :  { %vm432_vm6 = vcmp.gt.f32.partialorder %v427_v19, 0.5 }
 0x2cc   :  { %vm916_vm7 = vmpackc.low %vm432_vm6, %vm431_vm5  ;;  %v420_v22 = vpop.f32.mrb[14].mxu0 }
 0x2cd   :  { %v428_v23 = vand.u32 2147483647, %v420_v22  ;;  %v840_v24 = vpop.f32.mrb[15].mxu0  ;;  %917 = vmatpush3.bf16.msk.msra.mxu1 %vm916_vm7, %v915_v20 }
 0x2ce   :  { %849 = vmatprep.subr.mxu1 %v966_v1 }
 0x2cf   :  { %vm433_vm9 = vcmp.gt.f32.partialorder %v428_v23, 0.5 }
 0x2d1   :  { %850 = vmatpush3.msk.msra.mxu1 %vm433_vm9, %v420_v22 }
 0x2d2   :  { %852 = vmatmul.mubr.msk.f32.vlgmr.msra.gmra.mrb[14].mxu1 %vm192_vm8, %v440_v25 }
 0x2d3   :  { %854 = vmatprep.mubr.msk.f32.mxu1 %vm965_vm0, %v966_v1 }
 0x2d6   :  { %855 = vmatmul.mubr.msk.f32.gmra.mrb[16].mxu1 %vm192_vm8, %v441_v26 }
 0x2d7   :  { %857 = vmatprep.mubr.msk.f32.mxu1 %vm965_vm0, %v966_v1 }
 0x2da   :  { %858 = vmatmul.mubr.msk.f32.gmra.mrb[18].mxu1 %vm192_vm8, %v442_v27 }
 0x2db   :  { %860 = vmatprep.mubr.msk.f32.mxu1 %vm965_vm0, %v966_v1 }
 0x2de   :  { %861 = vmatmul.mubr.msk.f32.gmra.mrb[20].mxu1 %vm192_vm8, %v443_v28 }
 0x2df   :  { %863 = vmatprep.mubr.msk.f32.mxu1 %vm965_vm0, %v966_v1 }
 0x2e2   :  { %864 = vmatmul.mubr.msk.f32.gmra.mrb[22].mxu1 %vm192_vm8, %v444_v29 }
 0x3a5   :  { %v526_v30 = vpop.f32.mrb[14].mxu1 }
 0x3a6   :  { %v853_v31 = vpop.f32.mrb[15].mxu1  ;;  %v550_v32 = vand.u32 2147483647, %v526_v30 }
 0x3a8   :  { %vm555_vm10 = vcmp.gt.f32.partialorder %v550_v32, 0.5 }
 0x3a9   :  { %v531_v33 = vpop.f32.mrb[16].mxu1 }
 0x3aa   :  { %v551_v34 = vand.u32 2147483647, %v531_v33  ;;  %v919_v35 = vpack.c.bf16 %v531_v33, %v526_v30  ;;  %v856_v36 = vpop.f32.mrb[17].mxu1 }
 0x3ac   :  { %vm556_vm11 = vcmp.gt.f32.partialorder %v551_v34, 0.5 }
 0x3ad   :  { %vm920_vm12 = vmpackc.low %vm556_vm11, %vm555_vm10  ;;  %v536_v37 = vpop.f32.mrb[18].mxu1 }
 0x3ae   :  { %v859_v38 = vpop.f32.mrb[19].mxu1  ;;  %921 = vmatpush3.bf16.msk.msra.mxu0 %vm920_vm12, %v919_v35  ;;  %v552_v39 = vand.u32 2147483647, %v536_v37 }
 0x3af   :  { %922 = vmatprep.subr.bf16.mxu0 %v964_v0  ;;  %v567_v0 = vld [vmem:[#allocation2 + $0xa8] sm:$0xff] }
 0x3b0   :  { %vm557_vm13 = vcmp.gt.f32.partialorder %v552_v39, 0.5 }
 0x3b1   :  { %v541_v40 = vpop.f32.mrb[20].mxu1 }
 0x3b2   :  { %v553_v41 = vand.u32 2147483647, %v541_v40  ;;  %v923_v42 = vpack.c.bf16 %v541_v40, %v536_v37  ;;  %v862_v43 = vpop.f32.mrb[21].mxu1 }
 0x3b4   :  { %vm558_vm14 = vcmp.gt.f32.partialorder %v553_v41, 0.5 }
 0x3b5   :  { %vm924_vm15 = vmpackc.low %vm558_vm14, %vm557_vm13  ;;  %v546_v44 = vpop.f32.mrb[22].mxu1 }
 0x3b6   :  { %v554_v45 = vand.u32 2147483647, %v546_v44  ;;  %925 = vmatpush3.bf16.msk.msra.mxu0 %vm924_vm15, %v923_v42  ;;  %v865_v46 = vpop.f32.mrb[23].mxu1 }
 0x3b7   :  { %874 = vmatprep.subr.mxu0 %v966_v1 }
 0x3b8   :  { %vm559_vm1 = vcmp.gt.f32.partialorder %v554_v45, 0.5 }
 0x3ba   :  { %875 = vmatpush3.msk.msra.mxu0 %vm559_vm1, %v546_v44 }
 0x3bb   :  { %877 = vmatmul.mubr.msk.f32.vlgmr.msra.gmra.mrb[16].mxu0 %vm192_vm8, %v566_v47 }
 0x3bc   :  { %879 = vmatprep.mubr.msk.f32.mxu0 %vm965_vm0, %v966_v1 }
 0x3bf   :  { %880 = vmatmul.mubr.msk.f32.gmra.mrb[18].mxu0 %vm192_vm8, %v567_v0 }
 0x3c0   :  { %882 = vmatprep.mubr.msk.f32.mxu0 %vm965_vm0, %v966_v1 }
 0x3c3   :  { %883 = vmatmul.mubr.msk.f32.gmra.mrb[20].mxu0 %vm192_vm8, %v568_v48 }
 0x3c4   :  { %885 = vmatprep.mubr.msk.f32.mxu0 %vm965_vm0, %v966_v1 }
 0x3c7   :  { %886 = vmatmul.mubr.msk.f32.gmra.mrb[22].mxu0 %vm192_vm8, %v569_v49 }
 0x3c8   :  { %888 = vmatprep.mubr.msk.f32.mxu0 %vm965_vm0, %v966_v1 }
 0x3cb   :  { %889 = vmatmul.mubr.msk.f32.gmra.mrb[24].mxu0 %vm192_vm8, %v570_v50 }
 0x48e   :  { %v652_v51 = vpop.f32.mrb[16].mxu0 }
 0x48f   :  { %673 = vst [vmem:[%s1119_s3] sm:$0xff] %v652_v51  ;;  %v878_v52 = vpop.f32.mrb[17].mxu0 }
 0x492   :  { %v657_v53 = vpop.f32.mrb[18].mxu0 }
 0x493   :  { %674 = vst [vmem:[%s1119_s3 + $0x8] sm:$0xff] %v657_v53  ;;  %v881_v54 = vpop.f32.mrb[19].mxu0 }
 0x496   :  { %v662_v55 = vpop.f32.mrb[20].mxu0 }
 0x497   :  { %v884_v56 = vpop.f32.mrb[21].mxu0 }
 0x49a   :  { %v666_v57 = vpop.f32.mrb[22].mxu0 }
 0x49b   :  { %v887_v58 = vpop.f32.mrb[23].mxu0 }
 0x49e   :  { %v670_v1 = vpop.f32.mrb[24].mxu0 }
 0x49f   :  { %v890_v59 = vpop.f32.mrb[25].mxu0 }
 0x4a0   :  { %679 = vsyncpa [#allocation3], 1 }

</bundles_post_ra>
